<compile_context>
chip_gen: v5e
topology: v5e:2x2
jax: 0.10.0
libtpu: 0.0.40
codegen_flags: <defaults>
</compile_context>

<pallas_src>
import jax
import jax.numpy as jnp
from jax.experimental import pallas as pl
from jax.experimental.pallas import tpu as pltpu

HIDDEN = 32       # hidden_size (small test size; PyTorch script used 320)
VOCAB = 48        # output_size
MAX_LEN = 16      # max_length (PyTorch script used 60)
DECODE_STEPS = 8  # number of chained decoder steps run inside one kernel

NEG_INF = -1e30


def _round_up(x, m):
  return (x + m - 1) // m * m


def _padded_dims(H, L, V):
  return _round_up(H, 128), _round_up(L, 128), _round_up(V, 128)


def _pad2(m, rows, cols):
  out = jnp.zeros((rows, cols), m.dtype)
  return out.at[:m.shape[0], :m.shape[1]].set(m)


def _pad1(v, n):
  out = jnp.zeros((n,), v.dtype)
  return out.at[:v.shape[0]].set(v)


def make_attn_decoder_kernel(H, L, V):
  """Builds the per-step kernel for static sizes H (hidden), L (max_len), V (vocab)."""
  Hp, Lp, Vp = _padded_dims(H, L, V)

  # Column offsets inside the fused weight slab (all multiples of 128).
  E_OFF, E_W = 0, Lp + Hp                 # LHS = embedded : [wa_e | wc_e]
  H_OFF, H_W = E_OFF + E_W, Lp + 3 * Hp   # LHS = hidden   : [wa_h | whr | whz | whn]
  X_OFF, X_W = H_OFF + H_W, 3 * Hp        # LHS = relu(x)  : [wir | wiz | win]
  A_OFF = X_OFF + X_W                     # LHS = attn_app : [wc_a]
  O_OFF = A_OFF + Hp                      # LHS = h_new    : [wo]

  # Offsets inside the packed bias row (all multiples of 128).
  B_COMB = Lp
  B_R = Lp + Hp
  B_Z = Lp + 2 * Hp
  B_IN = Lp + 3 * Hp
  B_HN = Lp + 4 * Hp
  B_OUT = Lp + 5 * Hp

  def kernel(tok_ref, emb_ref, enc_ref, w_ref, b_ref, h0_ref, out_ref, h_ref):
    del tok_ref  # token gather is done by the embedding BlockSpec index_map

    @pl.when(pl.program_id(0) == 0)
    def _():
      h_ref[...] = h0_ref[...]            # load initial hidden into the carry

    emb = emb_ref[0]                      # (1, Hp) gathered embedding row (dropout = identity)
    hid = h_ref[...]                      # (1, Hp) carried hidden state
    b = b_ref[...]                        # (1, Lp + 5*Hp + Vp) packed biases (f32)

    emb_b = emb.astype(jnp.bfloat16)
    hid_b = hid.astype(jnp.bfloat16)

    # Fused matmuls sharing the same LHS (bf16 in, f32 accumulate).
    m_e = jnp.dot(emb_b, w_ref[:, E_OFF:E_OFF + E_W],
                  preferred_element_type=jnp.float32)          # (1, Lp+Hp)
    m_h = jnp.dot(hid_b, w_ref[:, H_OFF:H_OFF + H_W],
                  preferred_element_type=jnp.float32)          # (1, Lp+3Hp)

    # attn_weights = softmax(attn(cat(embedded[0], hidden[0])), dim=1) over L valid lanes.
    attn_logits = m_e[:, :Lp] + m_h[:, :Lp] + b[:, :Lp]
    lane_l = jax.lax.broadcasted_iota(jnp.int32, (1, Lp), 1)
    attn_logits = jnp.where(lane_l < L, attn_logits, NEG_INF)
    mx = jnp.max(attn_logits, axis=1, keepdims=True)
    ex = jnp.exp(attn_logits - mx)
    aw = ex * pl.reciprocal(jnp.sum(ex, axis=1, keepdims=True), approx=True)

    # attn_applied = bmm(attn_weights, encoder_outputs)
    attn_applied = jnp.dot(aw, enc_ref[...],
                           preferred_element_type=jnp.float32)  # (1, Hp)

    # output = relu(attn_combine(cat(embedded[0], attn_applied[0])))
    comb = (m_e[:, Lp:] +
            jnp.dot(attn_applied.astype(jnp.bfloat16), w_ref[:, A_OFF:A_OFF + Hp],
                    preferred_element_type=jnp.float32) +
            b[:, B_COMB:B_COMB + Hp])
    x = jnp.maximum(comb, 0.0)

    # Single-step GRU, PyTorch gate order (r, z, n); hidden gates were fused into m_h.
    gi = jnp.dot(x.astype(jnp.bfloat16), w_ref[:, X_OFF:X_OFF + X_W],
                 preferred_element_type=jnp.float32)            # (1, 3Hp)
    gh = m_h[:, Lp:]                                            # (1, 3Hp)
    r = jax.nn.sigmoid(gi[:, :Hp] + gh[:, :Hp] + b[:, B_R:B_R + Hp])
    z = jax.nn.sigmoid(gi[:, Hp:2 * Hp] + gh[:, Hp:2 * Hp] + b[:, B_Z:B_Z + Hp])
    n = jnp.tanh(gi[:, 2 * Hp:] + b[:, B_IN:B_IN + Hp] +
                 r * (gh[:, 2 * Hp:] + b[:, B_HN:B_HN + Hp]))
    h_new = (1.0 - z) * n + z * hid

    # output = log_softmax(out(gru_output), dim=1) over V valid lanes.
    logits = (jnp.dot(h_new.astype(jnp.bfloat16), w_ref[:, O_OFF:O_OFF + Vp],
                      preferred_element_type=jnp.float32) +
              b[:, B_OUT:B_OUT + Vp])
    lane_v = jax.lax.broadcasted_iota(jnp.int32, (1, Vp), 1)
    logits = jnp.where(lane_v < V, logits, NEG_INF)
    lm = jnp.max(logits, axis=1, keepdims=True)
    shifted = logits - lm
    lse = jnp.log(jnp.sum(jnp.exp(shifted), axis=1, keepdims=True))
    logp = shifted - lse

    # Carry hidden, single full-lane output store: [logp | h_new | attn_weights].
    h_ref[...] = h_new
    row = jnp.concatenate([logp, h_new, aw], axis=1)            # (1, Vp+Hp+Lp)
    out_ref[...] = row.reshape(1, 1, row.shape[-1])

  return kernel


def init_params(key, hidden, vocab, max_len):
  ks = jax.random.split(key, 11)
  s = 0.1
  return dict(
      embedding=jax.random.normal(ks[0], (vocab, hidden), jnp.float32) * s,
      w_attn=jax.random.normal(ks[1], (max_len, 2 * hidden), jnp.float32) * s,
      b_attn=jax.random.normal(ks[2], (max_len,), jnp.float32) * s,
      w_comb=jax.random.normal(ks[3], (hidden, 2 * hidden), jnp.float32) * s,
      b_comb=jax.random.normal(ks[4], (hidden,), jnp.float32) * s,
      w_ih=jax.random.normal(ks[5], (3 * hidden, hidden), jnp.float32) * s,
      w_hh=jax.random.normal(ks[6], (3 * hidden, hidden), jnp.float32) * s,
      b_ih=jax.random.normal(ks[7], (3 * hidden,), jnp.float32) * s,
      b_hh=jax.random.normal(ks[8], (3 * hidden,), jnp.float32) * s,
      w_out=jax.random.normal(ks[9], (vocab, hidden), jnp.float32) * s,
      b_out=jax.random.normal(ks[10], (vocab,), jnp.float32) * s,
  )


def pack_params(params):
  """One-time packing of PyTorch-layout params into lane-aligned kernel slabs."""
  V, H = params['embedding'].shape
  L = params['w_attn'].shape[0]
  Hp, Lp, Vp = _padded_dims(H, L, V)

  wa = params['w_attn']                 # (L, 2H)
  wa_e, wa_h = wa[:, :H].T, wa[:, H:].T  # (H, L) each
  wc = params['w_comb']                 # (H, 2H)
  wc_e, wc_a = wc[:, :H].T, wc[:, H:].T  # (H, H) each
  wih = params['w_ih'].T                # (H, 3H), gate order r|z|n
  whh = params['w_hh'].T                # (H, 3H)
  wo = params['w_out'].T                # (H, V)

  w_all = jnp.concatenate([
      # E-group (LHS = embedded)
      _pad2(wa_e, Hp, Lp), _pad2(wc_e, Hp, Hp),
      # H-group (LHS = hidden)
      _pad2(wa_h, Hp, Lp), _pad2(whh[:, :H], Hp, Hp),
      _pad2(whh[:, H:2 * H], Hp, Hp), _pad2(whh[:, 2 * H:], Hp, Hp),
      # X-group (LHS = relu output)
      _pad2(wih[:, :H], Hp, Hp), _pad2(wih[:, H:2 * H], Hp, Hp),
      _pad2(wih[:, 2 * H:], Hp, Hp),
      # A-group (LHS = attn_applied)
      _pad2(wc_a, Hp, Hp),
      # O-group (LHS = h_new)
      _pad2(wo, Hp, Vp),
  ], axis=1).astype(jnp.bfloat16)                      # (Hp, 2Lp + 8Hp + Vp)

  bih, bhh = params['b_ih'], params['b_hh']
  b_all = jnp.concatenate([
      _pad1(params['b_attn'], Lp),                     # attn bias
      _pad1(params['b_comb'], Hp),                     # combine bias
      _pad1(bih[:H] + bhh[:H], Hp),                    # b_r (input + hidden pre-summed)
      _pad1(bih[H:2 * H] + bhh[H:2 * H], Hp),          # b_z (input + hidden pre-summed)
      _pad1(bih[2 * H:], Hp),                          # b_in
      _pad1(bhh[2 * H:], Hp),                          # b_hn
      _pad1(params['b_out'], Vp),                      # output bias
  ]).reshape(1, -1)                                    # (1, Lp + 5Hp + Vp), f32

  # Embedding table as (V, 1, Hp) so a (1, 1, Hp) block == one padded row.
  emb = jnp.zeros((V, 1, Hp), jnp.float32).at[:, 0, :H].set(params['embedding'])

  return dict(embedding=emb, w_all=w_all, b_all=b_all)


@jax.jit
def attn_decoder_decode(tokens, hidden, encoder_outputs, packed):
  """Runs T chained decoder steps in one pallas_call.

  tokens: (T,) int32; hidden: (1,1,H); encoder_outputs: (L,H); packed: pack_params().
  Returns per-step (log_probs (T,V), hiddens (T,H), attn_weights (T,L)).
  """
  T = tokens.shape[0]
  H = hidden.shape[-1]
  L = encoder_outputs.shape[0]
  V = packed['embedding'].shape[0]
  Hp, Lp, Vp = _padded_dims(H, L, V)
  P = Vp + Hp + Lp

  enc_p = jnp.zeros((Lp, Hp), jnp.float32).at[:L, :H].set(encoder_outputs)
  h0 = jnp.zeros((1, Hp), jnp.float32).at[:, :H].set(hidden.reshape(1, H))

  grid_spec = pltpu.PrefetchScalarGridSpec(
      num_scalar_prefetch=1,
      grid=(T,),
      in_specs=[
          # Embedding row gathered by the kernel's own input DMA (token in SMEM).
          pl.BlockSpec((1, 1, Hp), lambda t, tok: (tok[t], 0, 0)),
          # Constant operands: same block every step -> resident in VMEM.
          pl.BlockSpec((Lp, Hp), lambda t, tok: (0, 0)),
          pl.BlockSpec(packed['w_all'].shape, lambda t, tok: (0, 0)),
          pl.BlockSpec(packed['b_all'].shape, lambda t, tok: (0, 0)),
          pl.BlockSpec((1, Hp), lambda t, tok: (0, 0)),
      ],
      out_specs=pl.BlockSpec((1, 1, P), lambda t, tok: (t, 0, 0)),
      scratch_shapes=[pltpu.VMEM((1, Hp), jnp.float32)],   # hidden-state carry
  )

  out = pl.pallas_call(
      make_attn_decoder_kernel(H, L, V),
      out_shape=jax.ShapeDtypeStruct((T, 1, P), jnp.float32),
      grid_spec=grid_spec,
      compiler_params=pltpu.CompilerParams(
          dimension_semantics=("arbitrary",)),   # sequential carry across steps
  )(tokens, packed['embedding'], enc_p, packed['w_all'], packed['b_all'], h0)

  out = out.reshape(T, P)
  log_probs = out[:, :V]
  hiddens = out[:, Vp:Vp + H]
  attn_w = out[:, Vp + Hp:Vp + Hp + L]
  return log_probs, hiddens, attn_w


def reference_forward(token, hidden, encoder_outputs, params):
  H = hidden.shape[-1]
  embedded = params['embedding'][token].reshape(1, H)
  hid = hidden.reshape(1, H)
  cat1 = jnp.concatenate([embedded, hid], axis=1)
  aw = jax.nn.softmax(cat1 @ params['w_attn'].T + params['b_attn'], axis=1)
  attn_applied = aw @ encoder_outputs
  cat2 = jnp.concatenate([embedded, attn_applied], axis=1)
  x = jax.nn.relu(cat2 @ params['w_comb'].T + params['b_comb'])
  gi = x @ params['w_ih'].T + params['b_ih']
  gh = hid @ params['w_hh'].T + params['b_hh']
  i_r, i_z, i_n = jnp.split(gi, 3, axis=1)
  h_r, h_z, h_n = jnp.split(gh, 3, axis=1)
  r = jax.nn.sigmoid(i_r + h_r)
  z = jax.nn.sigmoid(i_z + h_z)
  n = jnp.tanh(i_n + r * h_n)
  h_new = (1.0 - z) * n + z * hid
  logp = jax.nn.log_softmax(h_new @ params['w_out'].T + params['b_out'], axis=1)
  return logp, h_new.reshape(1, 1, H), aw


def reference_decode(tokens, hidden, encoder_outputs, params):
  def step(hid, tok):
    logp, hid_new, aw = reference_forward(tok, hid, encoder_outputs, params)
    return hid_new, (logp[0], hid_new[0, 0], aw[0])
  _, (logps, hids, aws) = jax.lax.scan(step, hidden, tokens)
  return logps, hids, aws


if __name__ == "__main__":
  key = jax.random.PRNGKey(0)
  kp, kh, ke, kt = jax.random.split(key, 4)

  params = init_params(kp, HIDDEN, VOCAB, MAX_LEN)
  packed = pack_params(params)                                  # packed once, reused forever
  tokens = jax.random.randint(kt, (DECODE_STEPS,), 0, VOCAB, dtype=jnp.int32)
  hidden = jax.random.normal(kh, (1, 1, HIDDEN), jnp.float32)   # initial hidden state
  encoder_outputs = jax.random.normal(ke, (MAX_LEN, HIDDEN), jnp.float32)

  out = attn_decoder_decode(tokens, hidden, encoder_outputs, packed)
  log_probs, hiddens, attn_w = jax.block_until_ready(out)

  ref_logp, ref_hids, ref_aw = reference_decode(tokens, hidden, encoder_outputs, params)

  # bf16 weights + approx reciprocal -> compare against the f32 reference with a
  # correspondingly loosened tolerance (observed error is O(1e-3)).
  assert jnp.allclose(log_probs, ref_logp, atol=5e-2, rtol=0.0)
  assert jnp.allclose(hiddens, ref_hids, atol=5e-2, rtol=0.0)
  assert jnp.allclose(attn_w, ref_aw, atol=5e-2, rtol=0.0)

  print("KERNEL_OK")
</pallas_src>

<mosaic_0001>
module attributes {stable_mosaic.version = 11 : i64} {
  func.func @kernel(%arg0: i32, %arg1: memref<8xi32, #tpu.memory_space<smem>>, %arg2: memref<1x1x128xf32, #tpu.memory_space<vmem>>, %arg3: memref<128x128xf32, #tpu.memory_space<vmem>>, %arg4: memref<128x1408xbf16, #tpu.memory_space<vmem>>, %arg5: memref<1x896xf32, #tpu.memory_space<vmem>>, %arg6: memref<1x128xf32, #tpu.memory_space<vmem>>, %arg7: memref<1x1x384xf32, #tpu.memory_space<vmem>>, %arg8: memref<1x128xf32, #tpu.memory_space<vmem>>) attributes {dimension_semantics = [#tpu.dimension_semantics<arbitrary>], iteration_bounds = array<i64: 8>, scalar_prefetch = 1 : i64, scratch_operands = 1 : i64, tpu.core_type = #tpu.core_type<tc>, window_params = [{transform_indices = @transform_0, window_bounds = array<i64: 1, 1, 128>}, {pipeline_mode = #tpu.pipeline_mode<synchronous>, transform_indices = @transform_1, window_bounds = array<i64: 128, 128>}, {pipeline_mode = #tpu.pipeline_mode<synchronous>, transform_indices = @transform_2, window_bounds = array<i64: 128, 1408>}, {pipeline_mode = #tpu.pipeline_mode<synchronous>, transform_indices = @transform_3, window_bounds = array<i64: 1, 896>}, {pipeline_mode = #tpu.pipeline_mode<synchronous>, transform_indices = @transform_4, window_bounds = array<i64: 1, 128>}, {transform_indices = @transform_5, window_bounds = array<i64: 1, 1, 384>}]} {
    %c0_i32 = arith.constant 0 : i32
    %0 = arith.cmpi eq, %arg0, %c0_i32 : i32
    %1 = arith.extui %0 : i1 to i32
    %c0_i32_0 = arith.constant 0 : i32
    %2 = arith.cmpi ne, %1, %c0_i32_0 : i32
    scf.if %2 {
      %c0_35 = arith.constant 0 : index
      %c0_36 = arith.constant 0 : index
      %106 = vector.load %arg6[%c0_35, %c0_36] : memref<1x128xf32, #tpu.memory_space<vmem>>, vector<1x128xf32>
      %c0_37 = arith.constant 0 : index
      %c0_38 = arith.constant 0 : index
      %107 = vector.load %arg8[%c0_37, %c0_38] : memref<1x128xf32, #tpu.memory_space<vmem>>, vector<1x128xf32>
      tpu.vector_store %arg8[%c0_37, %c0_38], %106 {strides = array<i32>} : memref<1x128xf32, #tpu.memory_space<vmem>>, vector<1x128xf32>,
    } else {
    }
    %c0 = arith.constant 0 : index
    %c0_1 = arith.constant 0 : index
    %c0_2 = arith.constant 0 : index
    %3 = vector.load %arg2[%c0, %c0_1, %c0_2] : memref<1x1x128xf32, #tpu.memory_space<vmem>>, vector<1x1x128xf32>
    %4 = vector.shape_cast %3 : vector<1x1x128xf32> to vector<1x128xf32>
    %c0_3 = arith.constant 0 : index
    %c0_4 = arith.constant 0 : index
    %5 = vector.load %arg8[%c0_3, %c0_4] : memref<1x128xf32, #tpu.memory_space<vmem>>, vector<1x128xf32>
    %c0_5 = arith.constant 0 : index
    %c0_6 = arith.constant 0 : index
    %6 = vector.load %arg5[%c0_5, %c0_6] : memref<1x896xf32, #tpu.memory_space<vmem>>, vector<1x896xf32>
    %7 = arith.truncf %4 : vector<1x128xf32> to vector<1x128xbf16>
    %8 = arith.truncf %5 : vector<1x128xf32> to vector<1x128xbf16>
    %c0_7 = arith.constant 0 : index
    %c0_8 = arith.constant 0 : index
    %9 = vector.load %arg4[%c0_7, %c0_8] : memref<128x1408xbf16, #tpu.memory_space<vmem>>, vector<128x256xbf16>
    %cst = arith.constant dense<0.000000e+00> : vector<1x256xf32>
    %10 = tpu.matmul %7, %9, %cst {dimension_numbers = #tpu.dot_dimension_numbers<[1], [0], [0], [1], [0, 0, 1, 1], [], []>} : vector<1x128xbf16>, vector<128x256xbf16>, vector<1x256xf32> -> vector<1x256xf32>
    %c0_9 = arith.constant 0 : index
    %c256 = arith.constant 256 : index
    %11 = vector.load %arg4[%c0_9, %c256] : memref<128x1408xbf16, #tpu.memory_space<vmem>>, vector<128x512xbf16>
    %cst_10 = arith.constant dense<0.000000e+00> : vector<1x512xf32>
    %12 = tpu.matmul %8, %11, %cst_10 {dimension_numbers = #tpu.dot_dimension_numbers<[1], [0], [0], [1], [0, 0, 1, 1], [], []>} : vector<1x128xbf16>, vector<128x512xbf16>, vector<1x512xf32> -> vector<1x512xf32>
    %13 = vector.extract_strided_slice %10 {offsets = [0, 0], sizes = [1, 128], strides = [1, 1]} : vector<1x256xf32> to vector<1x128xf32>
    %14 = vector.extract_strided_slice %12 {offsets = [0, 0], sizes = [1, 128], strides = [1, 1]} : vector<1x512xf32> to vector<1x128xf32>
    %15 = arith.addf %13, %14 : vector<1x128xf32>
    %16 = vector.extract_strided_slice %6 {offsets = [0, 0], sizes = [1, 128], strides = [1, 1]} : vector<1x896xf32> to vector<1x128xf32>
    %17 = arith.addf %15, %16 : vector<1x128xf32>
    %18 = tpu.iota {dimensions = array<i32: 1>} : vector<1x128xi32>
    %c16_i32 = arith.constant 16 : i32
    %19 = vector.broadcast %c16_i32 : i32 to vector<1x128xi32>
    %20 = arith.cmpi slt, %18, %19 : vector<1x128xi32>
    %cst_11 = arith.constant -1.000000e+30 : f32
    %21 = vector.broadcast %cst_11 : f32 to vector<1x128xf32>
    %22 = arith.select %20, %17, %21 : vector<1x128xi1>, vector<1x128xf32>
    %cst_12 = arith.constant dense<0xFF800000> : vector<1xf32>
    %23 = vector.multi_reduction <maximumf>, %22, %cst_12 [1] : vector<1x128xf32> to vector<1xf32>
    %24 = vector.shape_cast %23 : vector<1xf32> to vector<1x1xf32>
    %25 = vector.broadcast %24 : vector<1x1xf32> to vector<1x128xf32>
    %26 = arith.subf %22, %25 : vector<1x128xf32>
    %27 = math.exp %26 : vector<1x128xf32>
    %cst_13 = arith.constant dense<0.000000e+00> : vector<1xf32>
    %28 = vector.multi_reduction <add>, %27, %cst_13 [1] : vector<1x128xf32> to vector<1xf32>
    %29 = vector.shape_cast %28 : vector<1xf32> to vector<1x1xf32>
    %30 = tpu.reciprocal %29 {approx = true} : vector<1x1xf32> -> vector<1x1xf32>
    %31 = vector.broadcast %30 : vector<1x1xf32> to vector<1x128xf32>
    %32 = arith.mulf %27, %31 : vector<1x128xf32>
    %c0_14 = arith.constant 0 : index
    %c0_15 = arith.constant 0 : index
    %33 = vector.load %arg3[%c0_14, %c0_15] : memref<128x128xf32, #tpu.memory_space<vmem>>, vector<128x128xf32>
    %cst_16 = arith.constant dense<0.000000e+00> : vector<1x128xf32>
    %34 = tpu.matmul %32, %33, %cst_16 {dimension_numbers = #tpu.dot_dimension_numbers<[1], [0], [0], [1], [0, 0, 1, 1], [], []>} : vector<1x128xf32>, vector<128x128xf32>, vector<1x128xf32> -> vector<1x128xf32>
    %35 = vector.extract_strided_slice %10 {offsets = [0, 128], sizes = [1, 128], strides = [1, 1]} : vector<1x256xf32> to vector<1x128xf32>
    %36 = arith.truncf %34 : vector<1x128xf32> to vector<1x128xbf16>
    %c0_17 = arith.constant 0 : index
    %c1152 = arith.constant 1152 : index
    %37 = vector.load %arg4[%c0_17, %c1152] : memref<128x1408xbf16, #tpu.memory_space<vmem>>, vector<128x128xbf16>
    %cst_18 = arith.constant dense<0.000000e+00> : vector<1x128xf32>
    %38 = tpu.matmul %36, %37, %cst_18 {dimension_numbers = #tpu.dot_dimension_numbers<[1], [0], [0], [1], [0, 0, 1, 1], [], []>} : vector<1x128xbf16>, vector<128x128xbf16>, vector<1x128xf32> -> vector<1x128xf32>
    %39 = arith.addf %35, %38 : vector<1x128xf32>
    %40 = vector.extract_strided_slice %6 {offsets = [0, 128], sizes = [1, 128], strides = [1, 1]} : vector<1x896xf32> to vector<1x128xf32>
    %41 = arith.addf %39, %40 : vector<1x128xf32>
    %cst_19 = arith.constant 0.000000e+00 : f32
    %42 = vector.broadcast %cst_19 : f32 to vector<1x128xf32>
    %43 = arith.maximumf %41, %42 : vector<1x128xf32>
    %44 = arith.truncf %43 : vector<1x128xf32> to vector<1x128xbf16>
    %c0_20 = arith.constant 0 : index
    %c768 = arith.constant 768 : index
    %45 = vector.load %arg4[%c0_20, %c768] : memref<128x1408xbf16, #tpu.memory_space<vmem>>, vector<128x384xbf16>
    %cst_21 = arith.constant dense<0.000000e+00> : vector<1x384xf32>
    %46 = tpu.matmul %44, %45, %cst_21 {dimension_numbers = #tpu.dot_dimension_numbers<[1], [0], [0], [1], [0, 0, 1, 1], [], []>} : vector<1x128xbf16>, vector<128x384xbf16>, vector<1x384xf32> -> vector<1x384xf32>
    %47 = vector.extract_strided_slice %12 {offsets = [0, 128], sizes = [1, 384], strides = [1, 1]} : vector<1x512xf32> to vector<1x384xf32>
    %48 = vector.extract_strided_slice %46 {offsets = [0, 0], sizes = [1, 128], strides = [1, 1]} : vector<1x384xf32> to vector<1x128xf32>
    %49 = vector.extract_strided_slice %47 {offsets = [0, 0], sizes = [1, 128], strides = [1, 1]} : vector<1x384xf32> to vector<1x128xf32>
    %50 = arith.addf %48, %49 : vector<1x128xf32>
    %51 = vector.extract_strided_slice %6 {offsets = [0, 256], sizes = [1, 128], strides = [1, 1]} : vector<1x896xf32> to vector<1x128xf32>
    %52 = arith.addf %50, %51 : vector<1x128xf32>
    %53 = arith.negf %52 : vector<1x128xf32>
    %54 = math.exp %53 : vector<1x128xf32>
    %cst_22 = arith.constant 1.000000e+00 : f32
    %55 = vector.broadcast %cst_22 : f32 to vector<1x128xf32>
    %56 = arith.addf %55, %54 : vector<1x128xf32>
    %57 = arith.divf %55, %56 : vector<1x128xf32>
    %58 = vector.extract_strided_slice %46 {offsets = [0, 128], sizes = [1, 128], strides = [1, 1]} : vector<1x384xf32> to vector<1x128xf32>
    %59 = vector.extract_strided_slice %47 {offsets = [0, 128], sizes = [1, 128], strides = [1, 1]} : vector<1x384xf32> to vector<1x128xf32>
    %60 = arith.addf %58, %59 : vector<1x128xf32>
    %61 = vector.extract_strided_slice %6 {offsets = [0, 384], sizes = [1, 128], strides = [1, 1]} : vector<1x896xf32> to vector<1x128xf32>
    %62 = arith.addf %60, %61 : vector<1x128xf32>
    %63 = arith.negf %62 : vector<1x128xf32>
    %64 = math.exp %63 : vector<1x128xf32>
    %cst_23 = arith.constant 1.000000e+00 : f32
    %65 = vector.broadcast %cst_23 : f32 to vector<1x128xf32>
    %66 = arith.addf %65, %64 : vector<1x128xf32>
    %67 = arith.divf %65, %66 : vector<1x128xf32>
    %68 = vector.extract_strided_slice %46 {offsets = [0, 256], sizes = [1, 128], strides = [1, 1]} : vector<1x384xf32> to vector<1x128xf32>
    %69 = vector.extract_strided_slice %6 {offsets = [0, 512], sizes = [1, 128], strides = [1, 1]} : vector<1x896xf32> to vector<1x128xf32>
    %70 = arith.addf %68, %69 : vector<1x128xf32>
    %71 = vector.extract_strided_slice %47 {offsets = [0, 256], sizes = [1, 128], strides = [1, 1]} : vector<1x384xf32> to vector<1x128xf32>
    %72 = vector.extract_strided_slice %6 {offsets = [0, 640], sizes = [1, 128], strides = [1, 1]} : vector<1x896xf32> to vector<1x128xf32>
    %73 = arith.addf %71, %72 : vector<1x128xf32>
    %74 = arith.mulf %57, %73 : vector<1x128xf32>
    %75 = arith.addf %70, %74 : vector<1x128xf32>
    %76 = math.tanh %75 : vector<1x128xf32>
    %cst_24 = arith.constant 1.000000e+00 : f32
    %77 = vector.broadcast %cst_24 : f32 to vector<1x128xf32>
    %78 = arith.subf %77, %67 : vector<1x128xf32>
    %79 = arith.mulf %78, %76 : vector<1x128xf32>
    %80 = arith.mulf %67, %5 : vector<1x128xf32>
    %81 = arith.addf %79, %80 : vector<1x128xf32>
    %82 = arith.truncf %81 : vector<1x128xf32> to vector<1x128xbf16>
    %c0_25 = arith.constant 0 : index
    %c1280 = arith.constant 1280 : index
    %83 = vector.load %arg4[%c0_25, %c1280] : memref<128x1408xbf16, #tpu.memory_space<vmem>>, vector<128x128xbf16>
    %cst_26 = arith.constant dense<0.000000e+00> : vector<1x128xf32>
    %84 = tpu.matmul %82, %83, %cst_26 {dimension_numbers = #tpu.dot_dimension_numbers<[1], [0], [0], [1], [0, 0, 1, 1], [], []>} : vector<1x128xbf16>, vector<128x128xbf16>, vector<1x128xf32> -> vector<1x128xf32>
    %85 = vector.extract_strided_slice %6 {offsets = [0, 768], sizes = [1, 128], strides = [1, 1]} : vector<1x896xf32> to vector<1x128xf32>
    %86 = arith.addf %84, %85 : vector<1x128xf32>
    %87 = tpu.iota {dimensions = array<i32: 1>} : vector<1x128xi32>
    %c48_i32 = arith.constant 48 : i32
    %88 = vector.broadcast %c48_i32 : i32 to vector<1x128xi32>
    %89 = arith.cmpi slt, %87, %88 : vector<1x128xi32>
    %cst_27 = arith.constant -1.000000e+30 : f32
    %90 = vector.broadcast %cst_27 : f32 to vector<1x128xf32>
    %91 = arith.select %89, %86, %90 : vector<1x128xi1>, vector<1x128xf32>
    %cst_28 = arith.constant dense<0xFF800000> : vector<1xf32>
    %92 = vector.multi_reduction <maximumf>, %91, %cst_28 [1] : vector<1x128xf32> to vector<1xf32>
    %93 = vector.shape_cast %92 : vector<1xf32> to vector<1x1xf32>
    %94 = vector.broadcast %93 : vector<1x1xf32> to vector<1x128xf32>
    %95 = arith.subf %91, %94 : vector<1x128xf32>
    %96 = math.exp %95 : vector<1x128xf32>
    %cst_29 = arith.constant dense<0.000000e+00> : vector<1xf32>
    %97 = vector.multi_reduction <add>, %96, %cst_29 [1] : vector<1x128xf32> to vector<1xf32>
    %98 = vector.shape_cast %97 : vector<1xf32> to vector<1x1xf32>
    %99 = math.log %98 : vector<1x1xf32>
    %100 = vector.broadcast %99 : vector<1x1xf32> to vector<1x128xf32>
    %101 = arith.subf %95, %100 : vector<1x128xf32>
    %c0_30 = arith.constant 0 : index
    %c0_31 = arith.constant 0 : index
    %102 = vector.load %arg8[%c0_30, %c0_31] : memref<1x128xf32, #tpu.memory_space<vmem>>, vector<1x128xf32>
    tpu.vector_store %arg8[%c0_30, %c0_31], %81 {strides = array<i32>} : memref<1x128xf32, #tpu.memory_space<vmem>>, vector<1x128xf32>,
    %103 = tpu.concatenate %101, %81, %32 in 1 : vector<1x128xf32>, vector<1x128xf32>, vector<1x128xf32> -> vector<1x384xf32>
    %104 = vector.shape_cast %103 : vector<1x384xf32> to vector<1x1x384xf32>
    %c0_32 = arith.constant 0 : index
    %c0_33 = arith.constant 0 : index
    %c0_34 = arith.constant 0 : index
    %105 = vector.load %arg7[%c0_32, %c0_33, %c0_34] : memref<1x1x384xf32, #tpu.memory_space<vmem>>, vector<1x1x384xf32>
    tpu.vector_store %arg7[%c0_32, %c0_33, %c0_34], %104 {strides = array<i32>} : memref<1x1x384xf32, #tpu.memory_space<vmem>>, vector<1x1x384xf32>,
    return
  }
  func.func @transform_0(%arg0: i32, %arg1: memref<8xi32, #tpu.memory_space<smem>>) -> (i32, i32, i32) {
    %0 = arith.index_cast %arg0 : i32 to index
    %1 = memref.load %arg1[%0] : memref<8xi32, #tpu.memory_space<smem>>
    %c0_i32 = arith.constant 0 : i32
    %c0_i32_0 = arith.constant 0 : i32
    %c0_i32_1 = arith.constant 0 : i32
    return %1, %c0_i32, %c0_i32_0 : i32, i32, i32
  }
  func.func @transform_1(%arg0: i32, %arg1: memref<8xi32, #tpu.memory_space<smem>>) -> (i32, i32) {
    %c0_i32 = arith.constant 0 : i32
    %c0_i32_0 = arith.constant 0 : i32
    %c0_i32_1 = arith.constant 0 : i32
    return %c0_i32, %c0_i32_0 : i32, i32
  }
  func.func @transform_2(%arg0: i32, %arg1: memref<8xi32, #tpu.memory_space<smem>>) -> (i32, i32) {
    %c0_i32 = arith.constant 0 : i32
    %c0_i32_0 = arith.constant 0 : i32
    %c0_i32_1 = arith.constant 0 : i32
    return %c0_i32, %c0_i32_0 : i32, i32
  }
  func.func @transform_3(%arg0: i32, %arg1: memref<8xi32, #tpu.memory_space<smem>>) -> (i32, i32) {
    %c0_i32 = arith.constant 0 : i32
    %c0_i32_0 = arith.constant 0 : i32
    %c0_i32_1 = arith.constant 0 : i32
    return %c0_i32, %c0_i32_0 : i32, i32
  }
  func.func @transform_4(%arg0: i32, %arg1: memref<8xi32, #tpu.memory_space<smem>>) -> (i32, i32) {
    %c0_i32 = arith.constant 0 : i32
    %c0_i32_0 = arith.constant 0 : i32
    %c0_i32_1 = arith.constant 0 : i32
    return %c0_i32, %c0_i32_0 : i32, i32
  }
  func.func @transform_5(%arg0: i32, %arg1: memref<8xi32, #tpu.memory_space<smem>>) -> (i32, i32, i32) {
    %c0_i32 = arith.constant 0 : i32
    %c0_i32_0 = arith.constant 0 : i32
    %c0_i32_1 = arith.constant 0 : i32
    return %arg0, %c0_i32, %c0_i32_0 : i32, i32, i32
  }
}

</mosaic_0001>

<bundles_post_ra>
// kernel: attn_decoder_decode.1
= control target key start
LH: loop header
LB: loop body
LE: loop exit
PB: predicated region body
PF: predicated region fallthrough
CT: control target
= control target key end

     0   :  { %s1744_s24 = smov [#allocation4]   ;;  %s1924_s0 = inlined_call_operand.vmem [shape: s32[8], index: 0, kind: input, shape index: {}]   ;;  %s1925_s1 = inlined_call_operand.vmem [shape: f32[48,1,128], index: 1, kind: input, shape index: {}]   ;;  %s1926_s2 = inlined_call_operand.vmem [shape: f32[128,128], index: 2, kind: input, shape index: {}]   ;;  %s1927_s3 = inlined_call_operand.hbm [shape: bf16[128,1408], index: 3, kind: input, shape index: {}]   ;;  %s1928_s4 = inlined_call_operand.vmem [shape: f32[1,896], index: 4, kind: input, shape index: {}]   ;;  %s1929_s5 = inlined_call_operand.vmem [shape: f32[1,128], index: 5, kind: input, shape index: {}]   ;;  %s1930_s6 = inlined_call_operand.vmem [shape: f32[8,1,384], index: 6, kind: output, shape index: {}]  }
   0x1   :  { %s12_s23 = sshll.u32 %s1924_s0, 4  ;;  %s13_s23 = int_to_ptr.vmem [resolvable:$true] %s12_s23 }
   0x2   :  { %15 = dma.vmem_to_smem %s13_s23, 16, %s1744_s24, [#allocation3] }
   0x3   :  { %1734 = dma.done.wait [#allocation3], 16 }
   0x4   :  { %1735 = vsyncadd [#allocation3], 4294967280 }
   0x5   :  { %18 = sfence }
   0x6   :  { %19 = vsyncpa [#allocation6], 0  ;;  %s1786_s25 = smov 0  }
   0x7 LB: > { %s182_s0 = sshll.u32 %s1927_s3, 4  ;;  %s1195_s28 = sadd.s32 4294967295, %s1742_s25   ;;  %s1742_s25 = sphi %s1786_s25, %s25_s25   ;;  %s183_s0 = int_to_ptr.hbm [resolvable:$true] %s182_s0 }
   0x8   : > { %p1197_p0 = scmp.ge.s32.totalorder %s1742_s25, 1  ;;  %p168_p1 = scmp.lt.s32.totalorder %s1742_s25, 9 }
   0x9   : > { %p1198_p2 = scmp.ne.s32.totalorder %s1195_s28, 0  ;;  %p1656_p3 = scmp.eq.s32.totalorder %s1195_s28, 0 }
   0xa   : > { %p169_p4 = pnand %p1197_p0, %p168_p1  ;;  %s1745_s29 = smov [#allocation5]  }
   0xb   : > { %s184_s30 = sshll.u32 %s1745_s29, 4  ;;  %s1746_s7 = smov 704   ;;  %s185_s30 = int_to_ptr.vmem [resolvable:$true] %s184_s30 }
   0xc   : > { %p1652_p5 = pneg %p169_p4  ;;  %s1747_s8 = smov 44  }
   0xd   : > { %214 = sbr.rel (%p169_p4) target bundleno = 1300 (0x514), region = 40 }
   0xe   : > { %p1653_p6 = pnand %p1656_p3, %p1652_p5 }
  0x10   : > { %1655 = dma.hbm_to_vmem [thread:$0]  (!%p1653_p6), %s183_s0, 11264, %s185_s30, [#allocation6], %s1746_s7, %s1746_s7, %s1747_s8  }
  0x12   : > { %1737 = dma.done.wait (%p1656_p3), [#allocation6], 11264  }
  0x13   : > { %1739 = vsyncadd (%p1656_p3), [#allocation6], 4294956032  ;;  %p246_p7 = scmp.lt.s32.totalorder %s1195_s28, 7  ;;  %s241_s9 = sld [smem:[#allocation4 + %s1195_s28]] }
  0x15   : > { %s247_s10 = scalar_select %p246_p7, %s1195_s28, 7 }
  0x17   : > { %s1647_s11 = smul.u32 3, %s247_s10 }
  0x18   : > { %253 = sbr.rel (%p1198_p2) target bundleno = 31 (0x1f), region = 48 }
  0x19   : > { %s1800_s14 = scalar_lea.vmem %s1930_s6, %s1647_s11  ;;  %p242_p8 = scmp.lt.s32.totalorder %s241_s9, 47 }
  0x1b   : > { %s1932_s9 = smov (!%p242_p8, %s241_s9), 47 }
  0x1c   : > { %s244_s17 = scalar_lea.vmem %s1925_s1, %s1932_s9 }
  0x1d   : > { %v254_v0 = vld [vmem:[%s1929_s5] sm:$0x1] }
  0x1e   : > { %255 = vst [vmem:[#allocation2] sm:$0x1] %v254_v0 }
  0x1f PF: > { %v1261_v1 = vld [vmem:[#allocation5 + $0x268] sm:$0xf]  ;;  %v1574_v2 = vld [vmem:[#allocation5 + $0x290] sm:$0xf0]  ;;  %v1381_v3 = vld [vmem:[#allocation5 + $0x270] sm:$0xf]  ;;  %v629_v54 = vlaneseq }
  0x20   : > { %v1262_v4 = vor.u32 %v1574_v2, %v1261_v1  ;;  %v1605_v5 = vld [vmem:[#allocation5 + $0x298] sm:$0xf0]  ;;  %v1253_v6 = vld [vmem:[#allocation5 + $0x210] sm:$0xf]  ;;  %v1365_v9 = vld [vmem:[#allocation5 + $0x218] sm:$0xf] }
  0x21   : > { %v1572_v7 = vld [vmem:[#allocation5 + $0x238] sm:$0xf0]  ;;  %v1382_v8 = vor.u32 %v1605_v5, %v1381_v3  ;;  %v1601_v10 = vld [vmem:[#allocation5 + $0x240] sm:$0xf0]  ;;  %v1245_v13 = vld [vmem:[#allocation5 + $0x1b8] sm:$0xf] }
  0x22   : > { %357 = vmatpush.bf16.msra.mxu0 %v1262_v4  ;;  %v1254_v11 = vor.u32 %v1572_v7, %v1253_v6  ;;  %v1366_v12 = vor.u32 %v1601_v10, %v1365_v9  ;;  %v1570_v14 = vld [vmem:[#allocation5 + $0x1e0] sm:$0xf0]  ;;  %v1349_v15 = vld [vmem:[#allocation5 + $0x1c0] sm:$0xf]  ;;  %v1597_v16 = vld [vmem:[#allocation5 + $0x1e8] sm:$0xf0] }
  0x23   : > { %575 = vmatpush.bf16.msra.mxu2 %v1382_v8  ;;  %v1246_v17 = vor.u32 %v1570_v14, %v1245_v13  ;;  %v1350_v18 = vor.u32 %v1597_v16, %v1349_v15  ;;  %v1237_v19 = vld [vmem:[#allocation5 + $0x160] sm:$0xf]  ;;  %v1568_v20 = vld [vmem:[#allocation5 + $0x188] sm:$0xf0]  ;;  %v1333_v21 = vld [vmem:[#allocation5 + $0x168] sm:$0xf] }
  0x24   : > { %v1593_v22 = vld [vmem:[#allocation5 + $0x190] sm:$0xf0]  ;;  %v1238_v23 = vor.u32 %v1568_v20, %v1237_v19  ;;  %v1229_v25 = vld [vmem:[#allocation5 + $0x108] sm:$0xf]  ;;  %v1317_v27 = vld [vmem:[#allocation5 + $0x110] sm:$0xf] }
  0x25   : > { %v1334_v24 = vor.u32 %v1593_v22, %v1333_v21  ;;  %v1566_v26 = vld [vmem:[#allocation5 + $0x130] sm:$0xf0]  ;;  %v1589_v28 = vld [vmem:[#allocation5 + $0x138] sm:$0xf0]  ;;  %v1221_v31 = vld [vmem:[#allocation5 + $0xb0] sm:$0xf] }
  0x26   : > { %358 = vmatpush.bf16.msra.mxu0 %v1254_v11  ;;  %v1230_v29 = vor.u32 %v1566_v26, %v1229_v25  ;;  %v1318_v30 = vor.u32 %v1589_v28, %v1317_v27  ;;  %v1564_v32 = vld [vmem:[#allocation5 + $0xd8] sm:$0xf0]  ;;  %v1301_v33 = vld [vmem:[#allocation5 + $0xb8] sm:$0xf]  ;;  %v1585_v34 = vld [vmem:[#allocation5 + $0xe0] sm:$0xf0] }
  0x27   : > { %576 = vmatpush.bf16.msra.mxu2 %v1366_v12  ;;  %v1222_v35 = vor.u32 %v1564_v32, %v1221_v31  ;;  %v1302_v36 = vor.u32 %v1585_v34, %v1301_v33  ;;  %v1213_v37 = vld [vmem:[#allocation5 + $0x58] sm:$0xf]  ;;  %v1562_v38 = vld [vmem:[#allocation5 + $0x80] sm:$0xf0]  ;;  %v1285_v39 = vld [vmem:[#allocation5 + $0x60] sm:$0xf] }
  0x28   : > { %v1581_v40 = vld [vmem:[#allocation5 + $0x88] sm:$0xf0]  ;;  %v1214_v41 = vor.u32 %v1562_v38, %v1213_v37  ;;  %v1205_v43 = vld [vmem:[#allocation5] sm:$0xf]  ;;  %v1269_v45 = vld [vmem:[#allocation5 + $0x8] sm:$0xf] }
  0x29   : > { %v1286_v42 = vor.u32 %v1581_v40, %v1285_v39  ;;  %v1560_v44 = vld [vmem:[#allocation5 + $0x28] sm:$0xf0]  ;;  %v1577_v46 = vld [vmem:[#allocation5 + $0x30] sm:$0xf0]  ;;  %v256_v48 = vld [vmem:[%s244_s17] sm:$0x1] }
  0x2a   : > { %359 = vmatpush.bf16.msra.mxu0 %v1246_v17  ;;  %v1206_v47 = vor.u32 %v1560_v44, %v1205_v43  ;;  %v1270_v49 = vor.u32 %v1577_v46, %v1269_v45  ;;  %v1817_v50 = vld [vmem:[#allocation2] sm:$0x1]  ;;  %v1819_v51 = vpack.c.bf16 %v256_v48, %v256_v48  ;;  %v1828_v55 = vand.u32 127, %v629_v54  ;;  %v660_v0 = vld [vmem:[%s1926_s2 + $0x78] sm:$0xff]  ;;  %v659_v1 = vld [vmem:[%s1926_s2 + $0x70] sm:$0xff] }
  0x2b   : > { %577 = vmatpush.bf16.msra.mxu2 %v1350_v18  ;;  %v1823_v52 = vpack.c.bf16 %v1817_v50, %v1817_v50  ;;  %v1833_v56 = vld [vmem:[%s1928_s4] sm:$0xff]  ;;  %vm633_vm1 = vcmask 1040384   ;;  %v658_v2 = vld [vmem:[%s1926_s2 + $0x68] sm:$0xff]  ;;  %v656_v4 = vld [vmem:[%s1926_s2 + $0x58] sm:$0xff]  ;;  %vm1125_vm11 = vcmask 1041408   ;;  %vm1130_vm12 = vcmp.lt.s32.totalorder %v629_v54, 384 }
  0x2c   : > { %vm631_vm0 = vcmp.lt.s32.totalorder %v1828_v55, 16  ;;  %v657_v3 = vld [vmem:[%s1926_s2 + $0x60] sm:$0xff]  ;;  %v655_v5 = vld [vmem:[%s1926_s2 + $0x50] sm:$0xff]  ;;  %v654_v6 = vld [vmem:[%s1926_s2 + $0x48] sm:$0xff]  ;;  %vm1104_vm10 = vcmp.lt.s32.totalorder %v1828_v55, 48 }
  0x2d   : > { %v653_v7 = vld [vmem:[%s1926_s2 + $0x40] sm:$0xff]  ;;  %v652_v8 = vld [vmem:[%s1926_s2 + $0x38] sm:$0xff]  ;;  %v651_v9 = vld [vmem:[%s1926_s2 + $0x30] sm:$0xff] }
  0x2e   : > { %360 = vmatpush.bf16.msra.mxu0 %v1238_v23  ;;  %v650_v10 = vld [vmem:[%s1926_s2 + $0x28] sm:$0xff]  ;;  %v649_v16 = vld [vmem:[%s1926_s2 + $0x20] sm:$0xff]  ;;  %v648_v17 = vld [vmem:[%s1926_s2 + $0x18] sm:$0xff] }
  0x2f   : > { %578 = vmatpush.bf16.msra.mxu2 %v1334_v24  ;;  %v647_v18 = vld [vmem:[%s1926_s2 + $0x10] sm:$0xff]  ;;  %v646_v19 = vld [vmem:[%s1926_s2 + $0x8] sm:$0xff]  ;;  %v645_v20 = vld [vmem:[%s1926_s2] sm:$0xff] }
  0x30   : > { %v1603_v21 = vld [vmem:[#allocation5 + $0x274] sm:$0xf]  ;;  %v1383_v22 = vld [vmem:[#allocation5 + $0x29c] sm:$0xf0]  ;;  %v1599_v23 = vld [vmem:[#allocation5 + $0x21c] sm:$0xf] }
  0x31   : > { %v1386_v24 = vor.u32 %v1603_v21, %v1383_v22  ;;  %v1367_v25 = vld [vmem:[#allocation5 + $0x244] sm:$0xf0]  ;;  %v1595_v27 = vld [vmem:[#allocation5 + $0x1c4] sm:$0xf]  ;;  %v1351_v28 = vld [vmem:[#allocation5 + $0x1ec] sm:$0xf0] }
  0x32   : > { %361 = vmatpush.bf16.msra.mxu0 %v1230_v29  ;;  %v1370_v26 = vor.u32 %v1599_v23, %v1367_v25  ;;  %v1573_v29 = vld [vmem:[#allocation5 + $0x26c] sm:$0xf]  ;;  %v1571_v32 = vld [vmem:[#allocation5 + $0x214] sm:$0xf]  ;;  %v1354_v33 = vor.u32 %v1595_v27, %v1351_v28  ;;  %v1255_v34 = vld [vmem:[#allocation5 + $0x23c] sm:$0xf0] }
  0x33   : > { %579 = vmatpush.bf16.msra.mxu2 %v1318_v30  ;;  %588 = vmatpush.bf16.msra.mxu3 %v1386_v24  ;;  %v1263_v30 = vld [vmem:[#allocation5 + $0x294] sm:$0xf0]  ;;  %v1258_v37 = vor.u32 %v1571_v32, %v1255_v34  ;;  %v1569_v38 = vld [vmem:[#allocation5 + $0x1bc] sm:$0xf]  ;;  %v1247_v39 = vld [vmem:[#allocation5 + $0x1e4] sm:$0xf0] }
  0x34   : > { %v1266_v31 = vor.u32 %v1573_v29, %v1263_v30  ;;  %v1250_v43 = vor.u32 %v1569_v38, %v1247_v39  ;;  %v1567_v44 = vld [vmem:[#allocation5 + $0x164] sm:$0xf]  ;;  %v1239_v45 = vld [vmem:[#allocation5 + $0x18c] sm:$0xf0]  ;;  %v1303_v48 = vld [vmem:[#allocation5 + $0xe4] sm:$0xf0] }
  0x35   : > { %v1612_v21 = vld [vmem:[#allocation5 + $0x204] sm:$0xf0]  ;;  %v1413_v24 = vld [vmem:[#allocation5 + $0x184] sm:$0xf]  ;;  %v1611_v25 = vld [vmem:[#allocation5 + $0x1ac] sm:$0xf0] }
  0x36   : > { %362 = vmatpush.bf16.msra.mxu0 %v1222_v35  ;;  %v1591_v35 = vld [vmem:[#allocation5 + $0x16c] sm:$0xf]  ;;  %370 = vmatpush.bf16.msra.mxu1 %v1266_v31  ;;  %v1610_v27 = vld [vmem:[#allocation5 + $0x154] sm:$0xf0]  ;;  %v1405_v29 = vld [vmem:[#allocation5 + $0xd4] sm:$0xf] }
  0x37   : > { %580 = vmatpush.bf16.msra.mxu2 %v1302_v36  ;;  %589 = vmatpush.bf16.msra.mxu3 %v1370_v26  ;;  %v1335_v36 = vld [vmem:[#allocation5 + $0x194] sm:$0xf0]  ;;  %v1409_v26 = vld [vmem:[#allocation5 + $0x12c] sm:$0xf]  ;;  %v1609_v30 = vld [vmem:[#allocation5 + $0xfc] sm:$0xf0] }
  0x38   : > { %v1338_v40 = vor.u32 %v1591_v35, %v1335_v36  ;;  %v1410_v28 = vor.u32 %v1610_v27, %v1409_v26  ;;  %v1406_v31 = vor.u32 %v1609_v30, %v1405_v29  ;;  %v1401_v32 = vld [vmem:[#allocation5 + $0x7c] sm:$0xf]  ;;  %v1397_v35 = vld [vmem:[#allocation5 + $0x24] sm:$0xf]  ;;  %v1607_v36 = vld [vmem:[#allocation5 + $0x4c] sm:$0xf0] }
  0x39   : > { %v1389_v38 = vld [vmem:[#allocation5 + $0x278] sm:$0xf]  ;;  %v1606_v39 = vld [vmem:[#allocation5 + $0x2a0] sm:$0xf0]  ;;  %v1582_v26 = vld [vmem:[#allocation5 + $0x90] sm:$0xf0] }
  0x3a   : > { %363 = vmatpush.bf16.msra.mxu0 %v1214_v41  ;;  %v1587_v41 = vld [vmem:[#allocation5 + $0x114] sm:$0xf]  ;;  %371 = vmatpush.bf16.msra.mxu1 %v1258_v37  ;;  %v1398_v37 = vor.u32 %v1607_v36, %v1397_v35  ;;  %v1485_v27 = vld [vmem:[#allocation5 + $0x180] sm:$0xf]  ;;  %v1580_v29 = vld [vmem:[#allocation5 + $0x6c] sm:$0xf] }
  0x3b   : > { %581 = vmatpush.bf16.msra.mxu2 %v1286_v42  ;;  %590 = vmatpush.bf16.msra.mxu3 %v1354_v33  ;;  %v1319_v42 = vld [vmem:[#allocation5 + $0x13c] sm:$0xf0]  ;;  %v1608_v33 = vld [vmem:[#allocation5 + $0xa4] sm:$0xf0]  ;;  %v1295_v30 = vld [vmem:[#allocation5 + $0x94] sm:$0xf0] }
  0x3c   : > { %v1322_v46 = vor.u32 %v1587_v41, %v1319_v42  ;;  %v1402_v34 = vor.u32 %v1608_v33, %v1401_v32  ;;  %v1391_v41 = vld [vmem:[#allocation5 + $0x2a4] sm:$0xf0]  ;;  %v1373_v42 = vld [vmem:[#allocation5 + $0x220] sm:$0xf]  ;;  %v1277_v32 = vld [vmem:[#allocation5 + $0x10] sm:$0xf] }
  0x3d   : > { %v1578_v35 = vld [vmem:[#allocation5 + $0x38] sm:$0xf0]  ;;  %v1473_v36 = vld [vmem:[#allocation5 + $0x128] sm:$0xf] }
  0x3e   : > { %364 = vmatpush.bf16.msra.mxu0 %v1206_v47  ;;  %v1583_v47 = vld [vmem:[#allocation5 + $0xbc] sm:$0xf]  ;;  %372 = vmatpush.bf16.msra.mxu1 %v1250_v43  ;;  %v1602_v43 = vld [vmem:[#allocation5 + $0x248] sm:$0xf0] }
  0x3f   : > { %582 = vmatpush.bf16.msra.mxu2 %v1270_v49  ;;  %591 = vmatpush.bf16.msra.mxu3 %v1338_v40  ;;  %v1242_v49 = vor.u32 %v1567_v44, %v1239_v45  ;;  %v1390_v40 = vor.u32 %v1606_v39, %v1389_v38  ;;  %v1600_v45 = vld [vmem:[#allocation5 + $0x224] sm:$0xf]  ;;  %v1576_v38 = vld [vmem:[#allocation5 + $0x14] sm:$0xf]  ;;  %v1279_v39 = vld [vmem:[#allocation5 + $0x3c] sm:$0xf0] }
  0x41   : > { %365 = vmatmul.bf16.vlgmr.msra.gmra.mxu0 %v1819_v51 }
  0x42   : > { %583 = vmatmul.bf16.vlgmr.msra.gmra.mxu2 %v1823_v52  ;;  %373 = vmatpush.bf16.msra.mxu1 %v1242_v49  ;;  %v1357_v49 = vld [vmem:[#allocation5 + $0x1c8] sm:$0xf] }
  0x43   : > { %661 = vmatpush.msrb.mxu2 %v660_v0  ;;  %592 = vmatpush.bf16.msra.mxu3 %v1322_v46  ;;  %v1375_v46 = vld [vmem:[#allocation5 + $0x24c] sm:$0xf0] }
  0x44   : > { %601 = vmatpush.bf16.msrb.mxu0 %v1390_v40  ;;  %v1637_v40 = vld [vmem:[#allocation5 + $0x2a8] sm:$0xf0] }
  0x45   : > { %662 = vmatpush.msrb.mxu2 %v659_v1 }
  0x47   : > { %663 = vmatpush.msrb.mxu2 %v658_v2  ;;  %v1575_v2 = vld [vmem:[#allocation5 + $0xc] sm:$0xf] }
  0x49   : > { %664 = vmatpush.msrb.mxu2 %v657_v3  ;;  %v1271_v3 = vld [vmem:[#allocation5 + $0x34] sm:$0xf0] }
  0x4b   : > { %665 = vmatpush.msrb.mxu2 %v656_v4 }
  0x4d   : > { %666 = vmatpush.msrb.mxu2 %v655_v5  ;;  %v1425_v5 = vld [vmem:[#allocation5 + $0x28c] sm:$0xf] }
  0x4f   : > { %667 = vmatpush.msrb.mxu2 %v654_v6  ;;  %v1614_v6 = vld [vmem:[#allocation5 + $0x2b4] sm:$0xf0] }
  0x51   : > { %668 = vmatpush.msrb.mxu2 %v653_v7  ;;  %v1561_v7 = vld [vmem:[#allocation5 + $0x5c] sm:$0xf] }
  0x53   : > { %669 = vmatpush.msrb.mxu2 %v652_v8  ;;  %v1215_v8 = vld [vmem:[#allocation5 + $0x84] sm:$0xf0] }
  0x55   : > { %670 = vmatpush.msrb.mxu2 %v651_v9  ;;  %v1274_v9 = vor.u32 %v1575_v2, %v1271_v3  ;;  %v1325_v2 = vld [vmem:[#allocation5 + $0x118] sm:$0xf] }
  0x57   : > { %671 = vmatpush.msrb.mxu2 %v650_v10  ;;  %v1426_v10 = vor.u32 %v1614_v6, %v1425_v5  ;;  %v1521_v5 = vld [vmem:[#allocation5 + $0x288] sm:$0xf]  ;;  %v1638_v6 = vld [vmem:[#allocation5 + $0x2b0] sm:$0xf0] }
  0x59   : > { %672 = vmatpush.msrb.mxu2 %v649_v16 }
  0x5b   : > { %673 = vmatpush.msrb.mxu2 %v648_v17  ;;  %v1559_v17 = vld [vmem:[#allocation5 + $0x4] sm:$0xf] }
  0x5d   : > { %674 = vmatpush.msrb.mxu2 %v647_v18  ;;  %v1207_v18 = vld [vmem:[#allocation5 + $0x2c] sm:$0xf0] }
  0x5e   : > { %v1210_v22 = vor.u32 %v1559_v17, %v1207_v18  ;;  %v1586_v18 = vld [vmem:[#allocation5 + $0xe8] sm:$0xf0] }
  0x5f   : > { %675 = vmatpush.msrb.mxu2 %v646_v19 }
  0x61   : > { %676 = vmatpush.msrb.mxu2 %v645_v20  ;;  %v1417_v20 = vld [vmem:[#allocation5 + $0x1dc] sm:$0xf] }
  0x62   : > { %v1418_v23 = vor.u32 %v1612_v21, %v1417_v20  ;;  %v1632_v20 = vld [vmem:[#allocation5 + $0x200] sm:$0xf0] }
  0x63   : > { %v1584_v21 = vld [vmem:[#allocation5 + $0xc4] sm:$0xf] }
  0xbe   : > { %v366_v53 = vpop.f32.mrf.mxu0 }
  0xc5   : > { %v584_v57 = vpop.f32.mrf.mxu2 }
  0xc6   : > { %v627_v58 = vadd.f32 %v584_v57, %v366_v53  ;;  %v368_v59 = vpop.f32.mrf.mxu0  ;;  %v1565_v53 = vld [vmem:[#allocation5 + $0x10c] sm:$0xf]  ;;  %v1231_v57 = vld [vmem:[#allocation5 + $0x134] sm:$0xf0] }
  0xc7   : > { %v1579_v59 = vld [vmem:[#allocation5 + $0x64] sm:$0xf] }
  0xc8   : > { %v628_v60 = vadd.f32 %v627_v58, %v1833_v56  ;;  %v1306_v58 = vor.u32 %v1583_v47, %v1303_v48  ;;  %v1374_v47 = vor.u32 %v1602_v43, %v1373_v42  ;;  %v1378_v48 = vor.u32 %v1600_v45, %v1375_v46  ;;  %v1515_v42 = vld [vmem:[#allocation5 + $0x2ac] sm:$0xf0] }
  0xc9   : > { %v1278_v43 = vor.u32 %v1578_v35, %v1277_v32  ;;  %v1282_v45 = vor.u32 %v1576_v38, %v1279_v39  ;;  %v1461_v46 = vld [vmem:[#allocation5 + $0xd0] sm:$0xf]  ;;  %v1620_v35 = vld [vmem:[#allocation5 + $0xa0] sm:$0xf0]  ;;  %v1429_v38 = vld [vmem:[#allocation5 + $0x18] sm:$0xf] }
  0xca   : > { %v632_v61 = vsel %vm631_vm0, %v628_v60, -1e+30  ;;  %v1287_v60 = vld [vmem:[#allocation5 + $0x8c] sm:$0xf0]  ;;  %593 = vmatpush.bf16.msra.mxu3 %v1306_v58  ;;  %v1359_v58 = vld [vmem:[#allocation5 + $0x1f4] sm:$0xf0]  ;;  %602 = vmatpush.bf16.msrb.mxu0 %v1374_v47 }
  0xcb   : > { %v634_v62 = vsel %vm633_vm1, %v632_v61, -inf  ;;  %v1290_v1 = vor.u32 %v1579_v59, %v1287_v60  ;;  %v1623_v47 = vld [vmem:[#allocation5 + $0xf8] sm:$0xf0]  ;;  %v1616_v39 = vld [vmem:[#allocation5 + $0x40] sm:$0xf0] }
  0xcc   : > { %635 = vmax.xlane.f32.xlu0 %v634_v62  ;;  %v1563_v62 = vld [vmem:[#allocation5 + $0xb4] sm:$0xf] }
  0xcd   : > { %v586_v63 = vpop.f32.mrf.mxu2 }
  0xce   : > { %v1223_v63 = vld [vmem:[#allocation5 + $0xdc] sm:$0xf0]  ;;  %594 = vmatpush.bf16.msra.mxu3 %v1290_v1 }
  0xcf   : > { %v1226_v4 = vor.u32 %v1563_v62, %v1223_v63  ;;  %v1594_v62 = vld [vmem:[#allocation5 + $0x198] sm:$0xf0]  ;;  %v1592_v63 = vld [vmem:[#allocation5 + $0x174] sm:$0xf] }
  0xd2   : > { %595 = vmatpush.bf16.msra.mxu3 %v1274_v9  ;;  %v1522_v9 = vor.u32 %v1638_v6, %v1521_v5  ;;  %v1630_v5 = vld [vmem:[#allocation5 + $0x1d4] sm:$0xf]  ;;  %v1491_v6 = vld [vmem:[#allocation5 + $0x1fc] sm:$0xf0] }
  0xd4   : > { %952 = vmatpush.bf16.msra.mxu2 %v1522_v9  ;;  %v1477_v9 = vld [vmem:[#allocation5 + $0x178] sm:$0xf] }
  0xd5   : > { %596 = vmatmul.bf16.vlgmr.msra.gmra.mxu3 %v1823_v52 }
  0xd6   : > { %746 = vmatpush.bf16.msrb.mxu3 %v1426_v10  ;;  %v1509_v10 = vld [vmem:[#allocation5 + $0x230] sm:$0xf] }
 0x13f   : > { %v636_v11 = vpop.xlane.xlu0 %635 }
 0x140   : > { %v637_v12 = vsub.f32 %v632_v61, %v636_v11  ;;  %v1234_v61 = vor.u32 %v1565_v53, %v1231_v57  ;;  %v1598_v53 = vld [vmem:[#allocation5 + $0x1f0] sm:$0xf0]  ;;  %v1596_v57 = vld [vmem:[#allocation5 + $0x1cc] sm:$0xf] }
 0x141   : > { %v1358_v59 = vor.u32 %v1598_v53, %v1357_v49  ;;  %v1362_v60 = vor.u32 %v1596_v57, %v1359_v58  ;;  %v1501_v57 = vld [vmem:[#allocation5 + $0x228] sm:$0xf] }
 0x142   : > { %v638_v13 = vmul.f32 1.442695, %v637_v12  ;;  %374 = vmatpush.bf16.msra.mxu1 %v1234_v61  ;;  %v1421_v12 = vld [vmem:[#allocation5 + $0x234] sm:$0xf]  ;;  %v1341_v61 = vld [vmem:[#allocation5 + $0x170] sm:$0xf] }
 0x143   : > { %603 = vmatpush.bf16.msrb.mxu0 %v1358_v59  ;;  %v1342_v1 = vor.u32 %v1594_v62, %v1341_v61  ;;  %v1634_v59 = vld [vmem:[#allocation5 + $0x250] sm:$0xf0]  ;;  %v1503_v61 = vld [vmem:[#allocation5 + $0x254] sm:$0xf0] }
 0x144   : > { %1670 = vpow2.f32 %v638_v13  ;;  %v1613_v13 = vld [vmem:[#allocation5 + $0x25c] sm:$0xf0] }
 0x145   : > { %v1422_v19 = vor.u32 %v1613_v13, %v1421_v12  ;;  %v1309_v13 = vld [vmem:[#allocation5 + $0xc0] sm:$0xf] }
 0x146   : > { %375 = vmatpush.bf16.msra.mxu1 %v1226_v4  ;;  %v1590_v4 = vld [vmem:[#allocation5 + $0x140] sm:$0xf0] }
 0x147   : > { %747 = vmatpush.bf16.msrb.mxu3 %v1422_v19  ;;  %604 = vmatpush.bf16.msrb.mxu0 %v1342_v1  ;;  %v1326_v12 = vor.u32 %v1590_v4, %v1325_v2  ;;  %v1497_v19 = vld [vmem:[#allocation5 + $0x1d8] sm:$0xf]  ;;  %v1502_v1 = vor.u32 %v1634_v59, %v1501_v57  ;;  %v1631_v4 = vld [vmem:[#allocation5 + $0x1f8] sm:$0xf0] }
 0x14a   : > { %v1871_v14 = vpop.eup %1670 }
 0x14b   : > { %v640_v15 = vsel %vm633_vm1, %v1871_v14, 0.0  ;;  %748 = vmatpush.bf16.msrb.mxu3 %v1418_v23  ;;  %605 = vmatpush.bf16.msrb.mxu0 %v1326_v12  ;;  %v1310_v23 = vor.u32 %v1586_v18, %v1309_v13  ;;  %v1479_v12 = vld [vmem:[#allocation5 + $0x1a4] sm:$0xf0] }
 0x14c   : > { %641 = vadd.xlane.f32.xlu0 %v640_v15  ;;  %v1218_v15 = vor.u32 %v1561_v7, %v1215_v8  ;;  %v1588_v7 = vld [vmem:[#allocation5 + $0x11c] sm:$0xf]  ;;  %v1327_v8 = vld [vmem:[#allocation5 + $0x144] sm:$0xf0] }
 0x14d   : > { %v1330_v17 = vor.u32 %v1588_v7, %v1327_v8  ;;  %v1494_v8 = vor.u32 %v1630_v5, %v1491_v6  ;;  %v1645_v5 = vld [vmem:[#allocation5 + $0x260] sm:$0xf0] }
 0x14e   : > { %376 = vmatpush.bf16.msra.mxu1 %v1218_v15 }
 0x14f   : > { %606 = vmatpush.bf16.msrb.mxu0 %v1310_v23 }
 0x152   : > { %377 = vmatpush.bf16.msra.mxu1 %v1210_v22  ;;  %v1311_v22 = vld [vmem:[#allocation5 + $0xec] sm:$0xf0] }
 0x155   : > { %378 = vmatmul.bf16.vlgmr.msra.gmra.mxu1 %v1819_v51  ;;  %v1604_v51 = vld [vmem:[#allocation5 + $0x27c] sm:$0xf] }
 0x156   : > { %v1394_v44 = vor.u32 %v1604_v51, %v1391_v41  ;;  %v1513_v51 = vld [vmem:[#allocation5 + $0x280] sm:$0xf]  ;;  %v1636_v41 = vld [vmem:[#allocation5 + $0x284] sm:$0xf] }
 0x157   : > { %v1514_v49 = vor.u32 %v1637_v40, %v1513_v51  ;;  %v1518_v53 = vor.u32 %v1636_v41, %v1515_v42  ;;  %v1615_v51 = vld [vmem:[#allocation5 + $0x1c] sm:$0xf]  ;;  %v1430_v40 = vor.u32 %v1616_v39, %v1429_v38  ;;  %v1431_v41 = vld [vmem:[#allocation5 + $0x44] sm:$0xf0]  ;;  %v1437_v42 = vld [vmem:[#allocation5 + $0x20] sm:$0xf] }
 0x158   : > { %614 = vmatpush.bf16.msrb.mxu1 %v1394_v44  ;;  %v1896_v62 = vpop.f32.mrf.mxu3 }
 0x15c   : > { %615 = vmatpush.bf16.msrb.mxu1 %v1378_v48 }
 0x160   : > { %616 = vmatpush.bf16.msrb.mxu1 %v1362_v60  ;;  %v1633_v60 = vld [vmem:[#allocation5 + $0x22c] sm:$0xf]  ;;  %v599_v13 = vpop.f32.mrf.mxu3 }
 0x161   : > { %v1506_v2 = vor.u32 %v1633_v60, %v1503_v61  ;;  %v989_v13 = vperm.slane %v1833_v56, 3 }
 0x1bf   : > { %v642_v0 = vpop.xlane.xlu0 %641 }
 0x1c0   : > { %1672 = vrcp.f32 %v642_v0  ;;  %v1343_v0 = vld [vmem:[#allocation5 + $0x19c] sm:$0xf0] }
 0x1c1   : > { %v1346_v3 = vor.u32 %v1592_v63, %v1343_v0  ;;  %v1462_v0 = vor.u32 %v1623_v47, %v1461_v46 }
 0x1c3   : > { %617 = vmatpush.bf16.msrb.mxu1 %v1346_v3  ;;  %v1489_v3 = vld [vmem:[#allocation5 + $0x1d0] sm:$0xf] }
 0x1c4   : > { %v1490_v7 = vor.u32 %v1631_v4, %v1489_v3  ;;  %v1551_v4 = vld [vmem:[#allocation5 + $0x238] sm:$0xf] }
 0x1c5   : > { %v1552_v6 = vor.u32 %v1645_v5, %v1551_v4 }
 0x1c6   : > { %v1673_v11 = vpop.eup %1672 }
 0x1c7   : > { %v1891_v16 = vmul.f32 %v1673_v11, %v1871_v14  ;;  %v1414_v14 = vor.u32 %v1611_v25, %v1413_v24  ;;  %v1635_v11 = vld [vmem:[#allocation5 + $0x258] sm:$0xf0]  ;;  %v1293_v24 = vld [vmem:[#allocation5 + $0x68] sm:$0xf]  ;;  %v1498_v25 = vor.u32 %v1632_v20, %v1497_v19  ;;  %618 = vmatpush.bf16.msrb.mxu1 %v1330_v17  ;;  %v1465_v19 = vld [vmem:[#allocation5 + $0x120] sm:$0xf] }
 0x1c8   : > { %v1510_v15 = vor.u32 %v1635_v11, %v1509_v10  ;;  %v1628_v10 = vld [vmem:[#allocation5 + $0x1a0] sm:$0xf0]  ;;  %v1627_v11 = vld [vmem:[#allocation5 + $0x17c] sm:$0xf]  ;;  %v1625_v20 = vld [vmem:[#allocation5 + $0x148] sm:$0xf0] }
 0x1c9   : > { %677 = vmatmul.f32.vlgmr.msrb.gmra.mxu2 %v1891_v16  ;;  %749 = vmatpush.bf16.msrb.mxu3 %v1414_v14  ;;  %v1314_v14 = vor.u32 %v1584_v21, %v1311_v22  ;;  %v1478_v17 = vor.u32 %v1628_v10, %v1477_v9  ;;  %v1482_v18 = vor.u32 %v1627_v11, %v1479_v12  ;;  %v1624_v21 = vld [vmem:[#allocation5 + $0x124] sm:$0xf]  ;;  %v1467_v22 = vld [vmem:[#allocation5 + $0x14c] sm:$0xf0]  ;;  %v1543_v9 = vld [vmem:[#allocation5 + $0x188] sm:$0xf] }
 0x1ca   : > { %953 = vmatpush.bf16.msra.mxu2 %v1510_v15  ;;  %v1470_v23 = vor.u32 %v1624_v21, %v1467_v22  ;;  %v1643_v10 = vld [vmem:[#allocation5 + $0x1b0] sm:$0xf0]  ;;  %v966_v12 = vperm.slane %v1833_v56, 2  ;;  %v1642_v21 = vld [vmem:[#allocation5 + $0x158] sm:$0xf0] }
 0x1cb   : > { %619 = vmatpush.bf16.msrb.mxu1 %v1314_v14  ;;  %v1621_v14 = vld [vmem:[#allocation5 + $0xcc] sm:$0xf]  ;;  %v1544_v11 = vor.u32 %v1643_v10, %v1543_v9 }
 0x1cd   : > { %750 = vmatpush.bf16.msrb.mxu3 %v1410_v28  ;;  %v1629_v28 = vld [vmem:[#allocation5 + $0x1a8] sm:$0xf0] }
 0x1ce   : > { %954 = vmatpush.bf16.msra.mxu2 %v1498_v25  ;;  %v1486_v33 = vor.u32 %v1629_v28, %v1485_v27  ;;  %v1622_v25 = vld [vmem:[#allocation5 + $0xf0] sm:$0xf0] }
 0x1d1   : > { %751 = vmatpush.bf16.msrb.mxu3 %v1406_v31  ;;  %v1294_v31 = vor.u32 %v1582_v26, %v1293_v24  ;;  %v1453_v24 = vld [vmem:[#allocation5 + $0xc8] sm:$0xf]  ;;  %v1455_v26 = vld [vmem:[#allocation5 + $0xf4] sm:$0xf0] }
 0x1d2   : > { %955 = vmatpush.bf16.msra.mxu2 %v1486_v33  ;;  %v1898_v63 = vpop.f32.mrf.mxu1  ;;  %v1454_v27 = vor.u32 %v1622_v25, %v1453_v24  ;;  %v1458_v28 = vor.u32 %v1621_v14, %v1455_v26  ;;  %v1443_v33 = vld [vmem:[#allocation5 + $0x9c] sm:$0xf0]  ;;  %v1535_v14 = vld [vmem:[#allocation5 + $0xd8] sm:$0xf]  ;;  %v1641_v26 = vld [vmem:[#allocation5 + $0x100] sm:$0xf0] }
 0x1d3   : > { %607 = vmatpush.bf16.msrb.mxu0 %v1294_v31  ;;  %v1618_v31 = vld [vmem:[#allocation5 + $0x74] sm:$0xf] }
 0x1d5   : > { %752 = vmatpush.bf16.msrb.mxu3 %v1402_v34  ;;  %v1298_v34 = vor.u32 %v1580_v29, %v1295_v30  ;;  %v1441_v29 = vld [vmem:[#allocation5 + $0x70] sm:$0xf]  ;;  %v1619_v30 = vld [vmem:[#allocation5 + $0x98] sm:$0xf0] }
 0x1d6   : > { %v1442_v32 = vor.u32 %v1619_v30, %v1441_v29 }
 0x1d7   : > { %620 = vmatpush.bf16.msrb.mxu1 %v1298_v34  ;;  %608 = vmatpush.bf16.msrb.mxu0 %v1278_v43  ;;  %v1449_v34 = vld [vmem:[#allocation5 + $0x78] sm:$0xf]  ;;  %v1617_v43 = vld [vmem:[#allocation5 + $0x48] sm:$0xf0] }
 0x1d9   : > { %753 = vmatpush.bf16.msrb.mxu3 %v1398_v37  ;;  %v1626_v37 = vld [vmem:[#allocation5 + $0x150] sm:$0xf0] }
 0x1da   : > { %v1474_v44 = vor.u32 %v1626_v37, %v1473_v36  ;;  %609 = vmatmul.bf16.vlgmr.msrb.gmra.mxu0 %v1823_v52  ;;  %v381_v15 = vpop.f32.mrf.mxu1  ;;  %v1446_v36 = vor.u32 %v1618_v31, %v1443_v33  ;;  %v1450_v37 = vor.u32 %v1620_v35, %v1449_v34  ;;  %v1531_v31 = vld [vmem:[#allocation5 + $0x80] sm:$0xf]  ;;  %v1527_v33 = vld [vmem:[#allocation5 + $0x28] sm:$0xf]  ;;  %v1639_v34 = vld [vmem:[#allocation5 + $0x50] sm:$0xf0] }
 0x1db   : > { %621 = vmatpush.bf16.msrb.mxu1 %v1282_v45  ;;  %926 = vmatpush.bf16.msra.mxu0 %v1514_v49  ;;  %v1438_v45 = vor.u32 %v1617_v43, %v1437_v42 }
 0x1dc   : > { %956 = vmatpush.bf16.msra.mxu2 %v1474_v44  ;;  %v1434_v44 = vor.u32 %v1615_v51, %v1431_v41 }
 0x1de   : > { %622 = vmatmul.bf16.vlgmr.msrb.gmra.mxu1 %v1823_v52  ;;  %v1466_v52 = vor.u32 %v1625_v20, %v1465_v19  ;;  %v1539_v20 = vld [vmem:[#allocation5 + $0x130] sm:$0xf] }
 0x1df   : > { %939 = vmatpush.bf16.msra.mxu1 %v1518_v53  ;;  %927 = vmatpush.bf16.msra.mxu0 %v1502_v1  ;;  %v1555_v1 = vld [vmem:[#allocation5 + $0x290] sm:$0xf]  ;;  %v1540_v22 = vor.u32 %v1642_v21, %v1539_v20 }
 0x1e0   : > { %957 = vmatpush.bf16.msra.mxu2 %v1462_v0 }
 0x1e3   : > { %940 = vmatpush.bf16.msra.mxu1 %v1506_v2  ;;  %928 = vmatpush.bf16.msra.mxu0 %v1490_v7  ;;  %v1646_v2 = vld [vmem:[#allocation5 + $0x2b8] sm:$0xf0]  ;;  %v1547_v7 = vld [vmem:[#allocation5 + $0x1e0] sm:$0xf] }
 0x1e4   : > { %958 = vmatpush.bf16.msra.mxu2 %v1450_v37  ;;  %v1556_v3 = vor.u32 %v1646_v2, %v1555_v1 }
 0x1e6   : > { %1091 = vmatpush.bf16.msra.mxu3 %v1556_v3 }
 0x1e7   : > { %941 = vmatpush.bf16.msra.mxu1 %v1494_v8  ;;  %929 = vmatpush.bf16.msra.mxu0 %v1478_v17  ;;  %v1644_v8 = vld [vmem:[#allocation5 + $0x208] sm:$0xf0] }
 0x1e8   : > { %959 = vmatpush.bf16.msra.mxu2 %v1438_v45 }
 0x1ea   : > { %1092 = vmatpush.bf16.msra.mxu3 %v1552_v6 }
 0x1eb   : > { %942 = vmatpush.bf16.msra.mxu1 %v1482_v18  ;;  %930 = vmatpush.bf16.msra.mxu0 %v1466_v52 }
 0x1ef   : > { %943 = vmatpush.bf16.msra.mxu1 %v1470_v23  ;;  %931 = vmatpush.bf16.msra.mxu0 %v1454_v27 }
 0x1f3   : > { %944 = vmatpush.bf16.msra.mxu1 %v1458_v28  ;;  %932 = vmatpush.bf16.msra.mxu0 %v1442_v32  ;;  %v1536_v28 = vor.u32 %v1641_v26, %v1535_v14 }
 0x1f7   : > { %945 = vmatpush.bf16.msra.mxu1 %v1446_v36  ;;  %933 = vmatpush.bf16.msra.mxu0 %v1430_v40  ;;  %v1528_v36 = vor.u32 %v1639_v34, %v1527_v33 }
 0x1fb   : > { %946 = vmatpush.bf16.msra.mxu1 %v1434_v44 }
 0x24c   : > { %v678_v48 = vpop.f32.mrf.mxu2 }
 0x24d   : > { %v681_v58 = vpack.c.bf16 %v678_v48, %v678_v48  ;;  %v761_v48 = vperm.slane %v1833_v56, 1 }
 0x24f   : > { %754 = vmatmul.bf16.vlgmr.msrb.gmra.mxu3 %v681_v58 }
 0x257   : > { %v610_v46 = vpop.f32.mrf.mxu0 }
 0x25b   : > { %v1902_v47 = vpop.f32.mrf.mxu1 }
 0x25f   : > { %v612_v58 = vpop.f32.mrf.mxu0 }
 0x263   : > { %v625_v60 = vpop.f32.mrf.mxu1 }
 0x2d2   : > { %v755_v49 = vpop.f32.mrf.mxu3 }
 0x2d3   : > { %v759_v53 = vadd.f32 %v755_v49, %v1898_v63  ;;  %v1548_v63 = vor.u32 %v1644_v8, %v1547_v7 }
 0x2d5   : > { %v763_v57 = vadd.f32 %v761_v48, %v759_v53  ;;  %1093 = vmatpush.bf16.msra.mxu3 %v1548_v63  ;;  %v1014_v48 = vperm.slane %v1833_v56, 5 }
 0x2d7   : > { %v764_v59 = vmax.f32 %v763_v57, 0.0 }
 0x2d9   : > { %v765_v61 = vpack.c.bf16 %v764_v59, %v764_v59  ;;  %1094 = vmatpush.bf16.msra.mxu3 %v1544_v11  ;;  %v1011_v59 = vperm.slane %v1833_v56, 4 }
 0x2da   : > { %v757_v0 = vpop.f32.mrf.mxu3 }
 0x2db   : > { %934 = vmatmul.bf16.vlgmr.msra.gmra.mxu0 %v765_v61  ;;  %947 = vmatmul.bf16.vlgmr.msra.gmra.mxu1 %v765_v61 }
 0x2dc   : > { %960 = vmatmul.bf16.vlgmr.msra.gmra.mxu2 %v765_v61  ;;  %v1016_v61 = vadd.f32 %v1014_v48, %v1902_v47 }
 0x2dd   : > { %1095 = vmatpush.bf16.msra.mxu3 %v1540_v22 }
 0x2e1   : > { %1096 = vmatpush.bf16.msra.mxu3 %v1536_v28  ;;  %v1123_v28 = vrot.slane %v1891_v16, 6 }
 0x358   : > { %v935_v15 = vpop.f32.mrf.mxu0  ;;  %v948_v17 = vpop.f32.mrf.mxu1 }
 0x359   : > { %v965_v18 = vadd.f32 %v935_v15, %v1896_v62  ;;  %v988_v19 = vadd.f32 %v948_v17, %v610_v46  ;;  %v1640_v62 = vld [vmem:[#allocation5 + $0xa8] sm:$0xf0]  ;;  %v1089_v17 = vperm.slane %v1833_v56, 6 }
 0x35a   : > { %v1532_v32 = vor.u32 %v1640_v62, %v1531_v31 }
 0x35b   : > { %v968_v52 = vadd.f32 %v966_v12, %v965_v18  ;;  %v991_v23 = vadd.f32 %v989_v13, %v988_v19 }
 0x35c   : > { %1097 = vmatpush.bf16.msra.mxu3 %v1532_v32 }
 0x35d   : > { %v1523_v24 = vmul.f32 -1.442695, %v968_v52  ;;  %v1524_v25 = vmul.f32 -1.442695, %v991_v23 }
 0x35f   : > { %1674 = vpow2.f32 %v1523_v24  ;;  %v961_v27 = vpop.f32.mrf.mxu2 }
 0x360   : > { %1676 = vpow2.f32 %v1524_v25  ;;  %v937_v29 = vpop.f32.mrf.mxu0  ;;  %v950_v30 = vpop.f32.mrf.mxu1  ;;  %1098 = vmatpush.bf16.msra.mxu3 %v1528_v36  ;;  %v1013_v4 = vadd.f32 %v1011_v59, %v961_v27 }
 0x365   : > { %v1675_v35 = vpop.eup %1674 }
 0x366   : > { %v1677_v37 = vpop.eup %1676  ;;  %v972_v38 = vadd.f32 1.0, %v1675_v35 }
 0x367   : > { %v995_v39 = vadd.f32 1.0, %v1677_v37  ;;  %v963_v51 = vpop.f32.mrf.mxu2 }
 0x368   : > { %1678 = vrcp.f32 %v972_v38  ;;  %v984_v46 = vand.u32 2147483648, %v972_v38  ;;  %v982_v53 = vand.u32 2147483647, %v972_v38  ;;  %vm978_vm3 = vweird.f32 %v972_v38 }
 0x369   : > { %1680 = vrcp.f32 %v995_v39  ;;  %v1007_v3 = vand.u32 2147483648, %v995_v39  ;;  %vm1001_vm7 = vweird.f32 %v995_v39  ;;  %v1005_v6 = vand.u32 2147483647, %v995_v39 }
 0x36a   : > { %v985_v60 = vor.u32 1.1754944e-38, %v984_v46  ;;  %vm983_vm5 = vcmp.eq.f32.partialorder %v982_v53, 8.507059e+37 }
 0x36b   : > { %v1008_v63 = vor.u32 1.1754944e-38, %v1007_v3  ;;  %vm1006_vm9 = vcmp.eq.f32.partialorder %v1005_v6, 8.507059e+37 }
 0x36e   : > { %v1679_v40 = vpop.eup %1678 }
 0x36f   : > { %v1681_v41 = vpop.eup %1680  ;;  %v974_v42 = vmul.f32 %v1679_v40, %v972_v38  ;;  %vm979_vm2 = vweird.f32 %v1679_v40 }
 0x370   : > { %v997_v43 = vmul.f32 %v1681_v41, %v995_v39  ;;  %vm980_vm4 = vmor %vm978_vm3, %vm979_vm2  ;;  %vm1002_vm6 = vweird.f32 %v1681_v41 }
 0x371   : > { %v975_v44 = vsub.f32 1.0, %v974_v42  ;;  %vm1003_vm8 = vmor %vm1001_vm7, %vm1002_vm6 }
 0x372   : > { %v998_v45 = vsub.f32 1.0, %v997_v43 }
 0x373   : > { %v976_v49 = vmul.f32 %v1679_v40, %v975_v44 }
 0x374   : > { %v999_v57 = vmul.f32 %v1681_v41, %v998_v45 }
 0x375   : > { %v977_v58 = vadd.f32 %v1679_v40, %v976_v49 }
 0x376   : > { %v1000_v2 = vadd.f32 %v1681_v41, %v999_v57 }
 0x377   : > { %v981_v0 = vsel %vm980_vm4, %v1679_v40, %v977_v58 }
 0x378   : > { %v986_v1 = vsel %vm983_vm5, %v985_v60, %v981_v0  ;;  %v1004_v8 = vsel %vm1003_vm8, %v1681_v41, %v1000_v2 }
 0x379   : > { %v1017_v5 = vmul.f32 %v1016_v61, %v986_v1  ;;  %v1009_v9 = vsel %vm1006_vm9, %v1008_v63, %v1004_v8 }
 0x37a   : > { %v1020_v10 = vsub.f32 1.0, %v1009_v9  ;;  %v1022_v12 = vmul.f32 %v1009_v9, %v1817_v50 }
 0x37b   : > { %v1018_v7 = vadd.f32 %v1017_v5, %v1013_v4 }
 0x37d   : > { %1682 = vtanh.f32 %v1018_v7 }
 0x383   : > { %v1683_v11 = vpop.eup %1682 }
 0x384   : > { %v1021_v47 = vmul.f32 %v1683_v11, %v1020_v10 }
 0x386   : > { %v1023_v13 = vadd.f32 %v1022_v12, %v1021_v47 }
 0x388   : > { %v1024_v15 = vpack.c.bf16 %v1023_v13, %v1023_v13  ;;  %1118 = vst [vmem:[#allocation2] sm:$0x1] %v1023_v13  ;;  %v1122_v55 = vrot.slane %v1023_v13, 7 }
 0x38a   : > { %1099 = vmatmul.bf16.vlgmr.msra.gmra.mxu3 %v1024_v15 }
 0x40d   : > { %v1100_v18 = vpop.f32.mrf.mxu3 }
 0x40e   : > { %v1101_v19 = vadd.f32 %v1100_v18, %v1089_v17 }
 0x410   : > { %v1105_v20 = vsel %vm1104_vm10, %v1101_v19, -1e+30 }
 0x411   : > { %v1106_v21 = vsel %vm633_vm1, %v1105_v20, -inf }
 0x412   : > { %1107 = vmax.xlane.f32.xlu1 %v1106_v21 }
 0x415   : > { %v1102_v22 = vpop.f32.mrf.mxu3 }
 0x485   : > { %v1108_v52 = vpop.xlane.xlu1 %1107 }
 0x486   : > { %v1109_v23 = vsub.f32 %v1105_v20, %v1108_v52 }
 0x488   : > { %v1110_v24 = vmul.f32 1.442695, %v1109_v23 }
 0x48a   : > { %1684 = vpow2.f32 %v1110_v24 }
 0x490   : > { %v1685_v50 = vpop.eup %1684 }
 0x491   : > { %v1112_v25 = vsel %vm633_vm1, %v1685_v50, 0.0 }
 0x492   : > { %1113 = vadd.xlane.f32.xlu1 %v1112_v25 }
 0x505   : > { %v1114_v14 = vpop.xlane.xlu1 %1113 }
 0x506   : > { %1686 = vlog2.f32 %v1114_v14 }
 0x50c   : > { %v1687_v56 = vpop.eup %1686 }
 0x50d   : > { %v1116_v26 = vmul.f32 0.6931472, %v1687_v56 }
 0x50f   : > { %v1117_v27 = vsub.f32 %v1109_v23, %v1116_v26 }
 0x511   : > { %v1124_v29 = vsel %vm633_vm1, %v1117_v27, %v1122_v55 }
 0x512   : > { %v1126_v30 = vsel %vm1125_vm11, %v1124_v29, %v1123_v28 }
 0x513   : > { %1132 = vst.msk [vmem:[%s1800_s14] sm:$0x7] %vm1130_vm12, %v1126_v30 }
 0x514 PF: > { %s25_s25 = sadd.s32 1, %s1742_s25  }
 0x515   : > { %p22_p9 = scmp.ge.s32.totalorder %s25_s25, 10  }
 0x517   :  { %24 = sbr.rel (!%p22_p9) target bundleno = 7 (0x7), region = 79 }
 0x51c   :  { %1152 = vsyncpa [#allocation6], 1 }
 0x51d   :  { %1154 = vsyncpa [#allocation6 + $0x1], 1 }

</bundles_post_ra>
